<compile_context>
chip_gen: v7x
topology: tpu7x:2x2x1
jax: 0.10.0
libtpu: 0.0.40
codegen_flags: <defaults>
</compile_context>

<pallas_src>
import functools

import jax
import jax.numpy as jnp
from jax.experimental import pallas as pl
from jax.experimental.pallas import tpu as pltpu


def _round_up(v, m):
    return ((v + m - 1) // m) * m


def _vmem_params():
    """Returns (x double-buffer budget bytes, vmem_limit_bytes), generation aware."""
    cap = None
    try:
        info = pltpu.get_tpu_info()
        cap = int(getattr(info, "vmem_capacity_bytes"))
    except Exception:
        cap = None
    if cap is not None and cap >= 100 * 1024 * 1024:
        # v5e / v6e: 128 MiB of VMEM -> big tiles, high scoped limit.
        return 40 * 1024 * 1024, 96 * 1024 * 1024
    # v7x (64 MiB) or unknown: stay conservative, leave compiler headroom.
    return 20 * 1024 * 1024, 48 * 1024 * 1024


def _pick_tile_n(n, c, itemsize, x_budget_bytes, tile_n_override=None):
    """Row-tile size: per-step DMA byte target, VMEM ceiling, >=2 grid steps."""
    min_rows = max(8, 32 // itemsize)   # sublane packing: f32->8, bf16->16, int8->32
    if n <= min_rows:
        return max(n, 1)                # one partial block == full array (legal)
    two_step_cap = _round_up((n + 1) // 2, min_rows)   # keep >= 2 grid steps (v7x)
    if tile_n_override is not None:
        tn = _round_up(max(int(tile_n_override), min_rows), min_rows)
        return min(tn, _round_up(n, min_rows))
    row_bytes = max(c, 1) * itemsize
    target_rows = (8 * 1024 * 1024) // row_bytes       # >= ~8 MiB of x per grid step
    vmem_rows = x_budget_bytes // (2 * row_bytes)      # double-buffered x block
    tn = max(min_rows, min(target_rows, vmem_rows, 16384))
    tn = max(min_rows, (tn // min_rows) * min_rows)
    return min(tn, two_step_cap)


def _per_row_focal(x_ref, y_ref, ay_ref, *, gamma, n_valid):
    """Focal loss per row for one (TN, C) logits tile -> (TN, 1) f32 column."""
    i = pl.program_id(0)
    x = x_ref[...].astype(jnp.float32)        # (TN, C)
    y = y_ref[...]                            # (TN, 1) int32 labels
    a_y = ay_ref[...]                         # (TN, 1) f32 alpha[y]
    tn, c = x.shape

    # logsumexp over the class (lane) axis; log_softmax is never materialized.
    m = jnp.max(x, axis=-1, keepdims=True)
    lse = m + jnp.log(jnp.sum(jnp.exp(x - m), axis=-1, keepdims=True))

    # One-hot select of x[n, y[n]] (no dynamic per-row gather on TPU).
    # NOTE: labels outside [0, C) select nothing -> loss 0 for that row
    # (PyTorch would raise); callers must pass valid labels.
    col = jax.lax.broadcasted_iota(jnp.int32, (tn, c), 1)
    x_y = jnp.sum(jnp.where(col == y, x, 0.0), axis=-1, keepdims=True)

    log_pt = x_y - lse
    pt = jnp.exp(log_pt)
    ce = -a_y * log_pt

    # pt can round slightly above 1; clamp so the focal term never NaNs.
    base = jnp.maximum(1.0 - pt, 0.0)
    g = float(gamma)
    if g == 0.0:
        focal = jnp.ones_like(base)
    elif g == int(g) and 0 < int(g) <= 8:
        focal = base
        for _ in range(int(g) - 1):
            focal = focal * base
    else:
        # exp/log on the EUP instead of lax.pow; base == 0 correctly gives 0.
        focal = jnp.exp(g * jnp.log(base))

    loss = focal * ce

    # Rows of the (possibly partial) last block past N hold uninitialized
    # VMEM; mask them before anything downstream reduces them.
    row = jax.lax.broadcasted_iota(jnp.int32, (tn, 1), 0) + i * tn
    return jnp.where(row < n_valid, loss, 0.0)


def _focal_rows_kernel(x_ref, y_ref, ay_ref, out_ref, *, gamma, n_valid):
    """reduction='none': write the masked per-row loss column."""
    out_ref[...] = _per_row_focal(x_ref, y_ref, ay_ref, gamma=gamma, n_valid=n_valid)


def _focal_blocksum_kernel(x_ref, y_ref, ay_ref, out_ref, *, gamma, n_valid):
    """reduction='mean'/'sum': write one partial sum per grid step (1 store)."""
    loss = _per_row_focal(x_ref, y_ref, ay_ref, gamma=gamma, n_valid=n_valid)
    out_ref[...] = jnp.sum(loss, axis=0, keepdims=True).reshape(1, 1, 1)


def focal_loss(x, y, gamma, alpha=None, reduction="mean", tile_n=None):
    """Pallas TPU focal loss. x: (N, C) float logits, y: (N,) int labels."""
    if reduction is None:
        reduction = "none"
    if reduction not in ("none", "mean", "sum"):
        raise ValueError(f"{reduction} is not a valid value for reduction.")
    if gamma < 0:
        raise ValueError("The gamma term of the focal loss should be non-negative.")
    if x.ndim != 2:
        raise ValueError(f"x must be (N, C); got shape {x.shape}.")

    n, c = x.shape
    itemsize = jnp.dtype(x.dtype).itemsize
    y_i32 = jnp.asarray(y, jnp.int32)
    y2d = y_i32.reshape(n, 1)

    # Gather the per-row class weight in the wrapper (tiny O(N) take) so the
    # kernel skips one (TN, C) broadcast-multiply and one cross-lane reduce.
    if alpha is None:
        alpha_y = jnp.ones((n,), jnp.float32)
    else:
        alpha_y = jnp.take(jnp.asarray(alpha, jnp.float32), y_i32, axis=0)
    ay2d = alpha_y.reshape(n, 1).astype(jnp.float32)

    x_budget, vmem_limit = _vmem_params()
    tn = _pick_tile_n(n, c, itemsize, x_budget, tile_n)
    num_tiles = pl.cdiv(n, tn)
    grid = (num_tiles,)

    in_specs = [
        pl.BlockSpec((tn, c), lambda i: (i, 0)),   # logits tile
        pl.BlockSpec((tn, 1), lambda i: (i, 0)),   # labels column
        pl.BlockSpec((tn, 1), lambda i: (i, 0)),   # alpha[y] column
    ]
    cparams = pltpu.CompilerParams(
        dimension_semantics=("parallel",),
        vmem_limit_bytes=vmem_limit,
    )
    base_bytes = n * c * itemsize + 8 * n
    base_cost = dict(flops=8 * n * c, transcendentals=n * c + 3 * n)

    if reduction == "none":
        per_row = pl.pallas_call(
            functools.partial(_focal_rows_kernel, gamma=float(gamma), n_valid=n),
            out_shape=jax.ShapeDtypeStruct((n, 1), jnp.float32),
            grid_spec=pltpu.PrefetchScalarGridSpec(
                num_scalar_prefetch=0,
                grid=grid,
                in_specs=in_specs,
                out_specs=pl.BlockSpec((tn, 1), lambda i: (i, 0)),
            ),
            compiler_params=cparams,
            cost_estimate=pl.CostEstimate(bytes_accessed=base_bytes + 4 * n, **base_cost),
        )(x, y2d, ay2d)
        return per_row[:, 0]

    # 'mean' / 'sum': one f32 partial sum per grid step (3-D output so the
    # block's last two dims equal the array's -> always a legal BlockSpec).
    partial_sums = pl.pallas_call(
        functools.partial(_focal_blocksum_kernel, gamma=float(gamma), n_valid=n),
        out_shape=jax.ShapeDtypeStruct((num_tiles, 1, 1), jnp.float32),
        grid_spec=pltpu.PrefetchScalarGridSpec(
            num_scalar_prefetch=0,
            grid=grid,
            in_specs=in_specs,
            out_specs=pl.BlockSpec((1, 1, 1), lambda i: (i, 0, 0)),
        ),
        compiler_params=cparams,
        cost_estimate=pl.CostEstimate(bytes_accessed=base_bytes + 4 * num_tiles,
                                      **base_cost),
    )(x, y2d, ay2d)
    total = jnp.sum(partial_sums)
    if reduction == "mean":
        return total / n
    return total


def _focal_loss_ref(x, y, gamma, alpha, reduction):
    """Pure-JAX reference mirroring the PyTorch module."""
    xf = x.astype(jnp.float32)
    log_p = jax.nn.log_softmax(xf, axis=-1)
    log_pt = jnp.take_along_axis(log_p, y[:, None], axis=-1)[:, 0]
    a_y = alpha[y]
    ce = -a_y * log_pt
    pt = jnp.exp(log_pt)
    focal = jnp.maximum(1.0 - pt, 0.0) ** gamma
    loss = focal * ce
    if reduction == "mean":
        return loss.mean()
    if reduction == "sum":
        return loss.sum()
    return loss


if __name__ == "__main__":
    key = jax.random.PRNGKey(0)
    k1, k2, k3, k4, k5, k6 = jax.random.split(key, 6)
    failures = []

    def check(name, out, ref, rtol=1e-4, atol=1e-5):
        out = jax.block_until_ready(out)
        if not jnp.allclose(out, ref, rtol=rtol, atol=atol):
            failures.append(name)
            print(f"MISMATCH {name}: kernel={out} ref={ref}")

    # Case 1: small batch, class weights, integer gamma, auto tile (2 grid steps).
    n1, c1 = 50, 32
    x1 = jax.random.normal(k1, (n1, c1), dtype=jnp.float32)
    y1 = jax.random.randint(k2, (n1,), 0, c1, dtype=jnp.int32)
    alpha1 = jnp.linspace(0.5, 1.5, c1, dtype=jnp.float32)
    for red in ("mean", "sum", "none"):
        check(f"case1/{red}",
              focal_loss(x1, y1, 2.0, alpha=alpha1, reduction=red),
              _focal_loss_ref(x1, y1, 2.0, alpha1, red))

    # Case 2: multi-tile grid with a partial last block, fractional gamma, no alpha.
    n2, c2 = 300, 32
    x2 = jax.random.normal(k3, (n2, c2), dtype=jnp.float32)
    y2 = jax.random.randint(k4, (n2,), 0, c2, dtype=jnp.int32)
    alpha2 = jnp.ones((c2,), jnp.float32)
    for red in ("mean", "sum", "none"):
        check(f"case2/{red}",
              focal_loss(x2, y2, 2.5, alpha=None, reduction=red, tile_n=128),
              _focal_loss_ref(x2, y2, 2.5, alpha2, red))

    # Case 3: bf16 logits (16-row sublane packing), gamma = 1.
    n3, c3 = 64, 40
    x3 = jax.random.normal(k5, (n3, c3), dtype=jnp.float32).astype(jnp.bfloat16)
    y3 = jax.random.randint(k6, (n3,), 0, c3, dtype=jnp.int32)
    alpha3 = jnp.ones((c3,), jnp.float32)
    for red in ("mean", "none"):
        check(f"case3/{red}",
              focal_loss(x3, y3, 1.0, alpha=None, reduction=red),
              _focal_loss_ref(x3, y3, 1.0, alpha3, red))

    if not failures:
        print("KERNEL_OK")
</pallas_src>

<mosaic_0001>
module attributes {stable_mosaic.version = 11 : i64} {
  func.func @_focal_blocksum_kernel(%arg0: i32, %arg1: memref<32x32xf32, #tpu.memory_space<vmem>>, %arg2: memref<32x1xi32, #tpu.memory_space<vmem>>, %arg3: memref<32x1xf32, #tpu.memory_space<vmem>>, %arg4: memref<1x1x1xf32, #tpu.memory_space<vmem>>) attributes {dimension_semantics = [#tpu.dimension_semantics<parallel>], iteration_bounds = array<i64: 2>, scalar_prefetch = 0 : i64, scratch_operands = 0 : i64, tpu.core_type = #tpu.core_type<tc>, window_params = [{transform_indices = @transform_0, window_bounds = array<i64: 32, 32>}, {transform_indices = @transform_1, window_bounds = array<i64: 32, 1>}, {transform_indices = @transform_2, window_bounds = array<i64: 32, 1>}, {transform_indices = @transform_3, window_bounds = array<i64: 1, 1, 1>}]} {
    %c0 = arith.constant 0 : index
    %c0_0 = arith.constant 0 : index
    %0 = vector.load %arg1[%c0, %c0_0] : memref<32x32xf32, #tpu.memory_space<vmem>>, vector<32x32xf32>
    %c0_1 = arith.constant 0 : index
    %c0_2 = arith.constant 0 : index
    %1 = vector.load %arg2[%c0_1, %c0_2] : memref<32x1xi32, #tpu.memory_space<vmem>>, vector<32x1xi32>
    %c0_3 = arith.constant 0 : index
    %c0_4 = arith.constant 0 : index
    %2 = vector.load %arg3[%c0_3, %c0_4] : memref<32x1xf32, #tpu.memory_space<vmem>>, vector<32x1xf32>
    %cst = arith.constant dense<0xFF800000> : vector<32xf32>
    %3 = vector.multi_reduction <maximumf>, %0, %cst [1] : vector<32x32xf32> to vector<32xf32>
    %4 = vector.shape_cast %3 : vector<32xf32> to vector<32x1xf32>
    %5 = vector.broadcast %4 : vector<32x1xf32> to vector<32x32xf32>
    %6 = arith.subf %0, %5 : vector<32x32xf32>
    %7 = math.exp %6 : vector<32x32xf32>
    %cst_5 = arith.constant dense<0.000000e+00> : vector<32xf32>
    %8 = vector.multi_reduction <add>, %7, %cst_5 [1] : vector<32x32xf32> to vector<32xf32>
    %9 = vector.shape_cast %8 : vector<32xf32> to vector<32x1xf32>
    %10 = math.log %9 : vector<32x1xf32>
    %11 = arith.addf %4, %10 : vector<32x1xf32>
    %12 = tpu.iota {dimensions = array<i32: 1>} : vector<32x32xi32>
    %13 = vector.broadcast %1 : vector<32x1xi32> to vector<32x32xi32>
    %14 = arith.cmpi eq, %12, %13 : vector<32x32xi32>
    %cst_6 = arith.constant 0.000000e+00 : f32
    %15 = vector.broadcast %cst_6 : f32 to vector<32x32xf32>
    %16 = arith.select %14, %0, %15 : vector<32x32xi1>, vector<32x32xf32>
    %cst_7 = arith.constant dense<0.000000e+00> : vector<32xf32>
    %17 = vector.multi_reduction <add>, %16, %cst_7 [1] : vector<32x32xf32> to vector<32xf32>
    %18 = vector.shape_cast %17 : vector<32xf32> to vector<32x1xf32>
    %19 = arith.subf %18, %11 : vector<32x1xf32>
    %20 = math.exp %19 : vector<32x1xf32>
    %cst_8 = arith.constant 0.000000e+00 : f32
    %21 = vector.broadcast %cst_8 : f32 to vector<32x1xf32>
    %22 = arith.subf %21, %2 : vector<32x1xf32>
    %23 = arith.mulf %22, %19 : vector<32x1xf32>
    %cst_9 = arith.constant 1.000000e+00 : f32
    %24 = vector.broadcast %cst_9 : f32 to vector<32x1xf32>
    %25 = arith.subf %24, %20 : vector<32x1xf32>
    %cst_10 = arith.constant 0.000000e+00 : f32
    %26 = vector.broadcast %cst_10 : f32 to vector<32x1xf32>
    %27 = arith.maximumf %25, %26 : vector<32x1xf32>
    %28 = arith.mulf %27, %27 : vector<32x1xf32>
    %29 = arith.mulf %28, %23 : vector<32x1xf32>
    %30 = tpu.iota {dimensions = array<i32: 0>} : vector<32x1xi32>
    %c32_i32 = arith.constant 32 : i32
    %31 = arith.muli %arg0, %c32_i32 : i32
    %32 = vector.broadcast %31 : i32 to vector<32x1xi32>
    %33 = arith.addi %30, %32 : vector<32x1xi32>
    %c50_i32 = arith.constant 50 : i32
    %34 = vector.broadcast %c50_i32 : i32 to vector<32x1xi32>
    %35 = arith.cmpi slt, %33, %34 : vector<32x1xi32>
    %cst_11 = arith.constant 0.000000e+00 : f32
    %36 = vector.broadcast %cst_11 : f32 to vector<32x1xf32>
    %37 = arith.select %35, %29, %36 : vector<32x1xi1>, vector<32x1xf32>
    %cst_12 = arith.constant dense<0.000000e+00> : vector<1xf32>
    %38 = vector.multi_reduction <add>, %37, %cst_12 [0] : vector<32x1xf32> to vector<1xf32>
    %39 = vector.shape_cast %38 : vector<1xf32> to vector<1x1xf32>
    %40 = vector.shape_cast %39 : vector<1x1xf32> to vector<1x1x1xf32>
    %c0_13 = arith.constant 0 : index
    %c0_14 = arith.constant 0 : index
    %c0_15 = arith.constant 0 : index
    %41 = vector.load %arg4[%c0_13, %c0_14, %c0_15] : memref<1x1x1xf32, #tpu.memory_space<vmem>>, vector<1x1x1xf32>
    tpu.vector_store %arg4[%c0_13, %c0_14, %c0_15], %40 {strides = array<i32>} : memref<1x1x1xf32, #tpu.memory_space<vmem>>, vector<1x1x1xf32>,
    return
  }
  func.func @transform_0(%arg0: i32) -> (i32, i32) {
    %c0_i32 = arith.constant 0 : i32
    %c0_i32_0 = arith.constant 0 : i32
    return %arg0, %c0_i32 : i32, i32
  }
  func.func @transform_1(%arg0: i32) -> (i32, i32) {
    %c0_i32 = arith.constant 0 : i32
    %c0_i32_0 = arith.constant 0 : i32
    return %arg0, %c0_i32 : i32, i32
  }
  func.func @transform_2(%arg0: i32) -> (i32, i32) {
    %c0_i32 = arith.constant 0 : i32
    %c0_i32_0 = arith.constant 0 : i32
    return %arg0, %c0_i32 : i32, i32
  }
  func.func @transform_3(%arg0: i32) -> (i32, i32, i32) {
    %c0_i32 = arith.constant 0 : i32
    %c0_i32_0 = arith.constant 0 : i32
    %c0_i32_1 = arith.constant 0 : i32
    return %arg0, %c0_i32, %c0_i32_0 : i32, i32, i32
  }
}

</mosaic_0001>

<bundles_post_ra>
// kernel: tpu_custom_call.1
= control target key start
LH: loop header
LB: loop body
LE: loop exit
PB: predicated region body
PF: predicated region fallthrough
CT: control target
= control target key end

     0   :  { %s588_s12 = smov 0   ;;  %s653_s0 = inlined_call_operand.vmem [shape: f32[50,32], index: 0, kind: input, shape index: {}]   ;;  %s654_s1 = inlined_call_operand.vmem [shape: s32[50,1], index: 1, kind: input, shape index: {}]   ;;  %s655_s2 = inlined_call_operand.vmem [shape: f32[50,1], index: 2, kind: input, shape index: {}]   ;;  %s656_s3 = inlined_call_operand.vmem [shape: f32[2,1,1], index: 3, kind: output, shape index: {}]  }
   0x1 LB: > { %s594_s13 = sadd.s32 4294967295, %s565_s12   ;;  %p514_p0 = scmp.ge.s32.totalorder %s565_s12, 1  ;;  %s565_s12 = sphi %s588_s12, %s13_s12  }
   0x2   : > { %p184_p1 = scmp.lt.s32.totalorder %s565_s12, 3 }
   0x4   : > { %p185_p2 = pnand %p514_p0, %p184_p1 }
   0x5   : > { %s515_s14 = sshll.u32 (!%p185_p2), %s594_s13, 2  ;;  %v567_v0 = vmov (!%p185_p2), 0   ;;  %vm285_vm0 = vcmask (!%p185_p2), 261120   ;;  %v334_v26 = vlaneseq (!%p185_p2)  ;;  %s521_s25 = sshll.u32 (!%p185_p2), %s594_s13, 5  ;;  %vm423_vm8 = vcmask (!%p185_p2), 7168  }
   0x6   : > { %188 = sbr.rel (%p185_p2) target bundleno = 382 (0x17e), region = 32  ;;  %p233_p3 = scmp.lt.s32.totalorder (!%p185_p2), %s515_s14, 6  ;;  %534 = vset.pattern.permute.xlu1 (!%p185_p2), %v567_v0  ;;  %533 = vset.pattern.permute.xlu0 (!%p185_p2), %v567_v0  ;;  %vm437_vm10 = vcmask (!%p185_p2), 0  }
   0x7   : > { %v335_v27 = vand.u32 (!%p185_p2), 127, %v334_v26  ;;  %p270_p4 = scmp.lt.s32.totalorder (!%p185_p2), %s594_s13, 1 }
   0xd   : > { %s658_s14 = smov (!%p233_p3, %s515_s14), 6  ;;  %s660_s13 = smov (!%p270_p4, %s594_s13), 1 }
   0xe   : > { %s599_s15 = sshll.u32 %s658_s14, 3  ;;  %s272_s28 = scalar_lea.vmem %s656_s3, %s660_s13 }
   0xf   : > { %s236_s18 = scalar_lea.vmem %s653_s0, %s599_s15  ;;  %s250_s21 = scalar_lea.vmem %s654_s1, %s599_s15 }
  0x10   : > { %v273_v1 = vld [vmem:[%s236_s18] sm:$0xff]  ;;  %v275_v2 = vld [vmem:[%s236_s18 + $0x10] sm:$0xff]  ;;  %v274_v3 = vld [vmem:[%s236_s18 + $0x8] sm:$0xff]  ;;  %s264_s24 = scalar_lea.vmem %s655_s2, %s599_s15 }
  0x11   : > { %v286_v4 = vsel %vm285_vm0, %v273_v1, -inf  ;;  %v292_v5 = vsel %vm285_vm0, %v275_v2, -inf  ;;  %v607_v6 = vld [vmem:[%s236_s18 + $0x18] sm:$0xff]  ;;  %v289_v7 = vsel %vm285_vm0, %v274_v3, -inf  ;;  %v278_v9 = vld [vmem:[%s250_s21 + $0x8] sm:$0xff]  ;;  %v279_v10 = vld [vmem:[%s250_s21 + $0x10] sm:$0xff] }
  0x12   : > { %287 = vmax.xlane.f32.xlu0 %v286_v4  ;;  %293 = vmax.xlane.f32.xlu1 %v292_v5  ;;  %v295_v8 = vsel %vm285_vm0, %v607_v6, -inf  ;;  %v277_v11 = vld [vmem:[%s250_s21] sm:$0xff]  ;;  %v280_v12 = vld [vmem:[%s250_s21 + $0x18] sm:$0xff] }
  0x16   : > { %290 = vmax.xlane.f32.xlu0 %v289_v7  ;;  %296 = vmax.xlane.f32.xlu1 %v295_v8 }
  0x27   : > { %340 = vperm.xlu1 %534, %v278_v9  }
  0x2b   : > { %343 = vperm.xlu1 %534, %v279_v10  }
  0x2c   : > { %337 = vperm.xlu0 %533, %v277_v11   ;;  %v281_v11 = vld [vmem:[%s264_s24] sm:$0xff] }
  0x2f   : > { %346 = vperm.xlu1 %534, %v280_v12  }
  0x9f   : > { %v288_v13 = vpop.xlane.xlu0 %287  ;;  %v616_v14 = vpop.xlane.xlu1 %293 }
  0xa0   : > { %v298_v15 = vsub.f32 %v273_v1, %v288_v13  ;;  %v300_v16 = vsub.f32 %v275_v2, %v616_v14 }
  0xa2   : > { %v302_v17 = vmul.f32 1.442695, %v298_v15  ;;  %v306_v18 = vmul.f32 1.442695, %v300_v16  ;;  %v380_v16 = vsub.f32 0.0, %v281_v11 }
  0xa3   : > { %v619_v19 = vpop.xlane.xlu0 %290  ;;  %v621_v20 = vpop.xlane.xlu1 %296 }
  0xa4   : > { %535 = vpow2.f32 %v302_v17  ;;  %v299_v21 = vsub.f32 %v274_v3, %v619_v19  ;;  %v301_v22 = vsub.f32 %v607_v6, %v621_v20  ;;  %v283_v17 = vld [vmem:[%s264_s24 + $0x10] sm:$0xff] }
  0xa5   : > { %537 = vpow2.f32 %v306_v18 }
  0xa6   : > { %v304_v23 = vmul.f32 1.442695, %v299_v21  ;;  %v308_v24 = vmul.f32 1.442695, %v301_v22 }
  0xa7   : > { %v341_v25 = vpop.permute.xlu1 %340 }
  0xa8   : > { %539 = vpow2.f32 %v304_v23  ;;  %vm349_vm3 = vcmp.eq.s32.totalorder %v335_v27, %v341_v25 }
  0xa9   : > { %541 = vpow2.f32 %v308_v24  ;;  %v353_v43 = vsel %vm349_vm3, %v274_v3, 0.0 }
  0xaa   : > { %v359_v44 = vsel %vm285_vm0, %v353_v43, 0.0 }
  0xab   : > { %v344_v29 = vpop.permute.xlu1 %343  ;;  %v338_v32 = vpop.permute.xlu0 %337 }
  0xac   : > { %vm350_vm1 = vcmp.eq.s32.totalorder %v335_v27, %v344_v29  ;;  %vm348_vm2 = vcmp.eq.s32.totalorder %v335_v27, %v338_v32  ;;  %v284_v32 = vld [vmem:[%s264_s24 + $0x18] sm:$0xff] }
  0xad   : > { %v354_v35 = vsel %vm350_vm1, %v275_v2, 0.0  ;;  %v352_v40 = vsel %vm348_vm2, %v273_v1, 0.0 }
  0xae   : > { %v536_v28 = vpop.eup %535  ;;  %v362_v39 = vsel %vm285_vm0, %v354_v35, 0.0  ;;  %v356_v41 = vsel %vm285_vm0, %v352_v40, 0.0 }
  0xaf   : > { %v538_v30 = vpop.eup %537  ;;  %v310_v31 = vsel %vm285_vm0, %v536_v28, 0.0  ;;  %v347_v42 = vpop.permute.xlu1 %346 }
  0xb0   : > { %311 = vadd.xlane.f32.xlu1 %v310_v31  ;;  %v316_v33 = vsel %vm285_vm0, %v538_v30, 0.0  ;;  %vm351_vm4 = vcmp.eq.s32.totalorder %v335_v27, %v347_v42  ;;  %v382_v27 = vsub.f32 0.0, %v283_v17 }
  0xb1   : > { %v355_v45 = vsel %vm351_vm4, %v607_v6, 0.0 }
  0xb2   : > { %v540_v34 = vpop.eup %539  ;;  %v365_v46 = vsel %vm285_vm0, %v355_v45, 0.0 }
  0xb3   : > { %v542_v36 = vpop.eup %541  ;;  %v313_v37 = vsel %vm285_vm0, %v540_v34, 0.0 }
  0xb4   : > { %317 = vadd.xlane.f32.xlu1 %v316_v33  ;;  %314 = vadd.xlane.f32.xlu0 %v313_v37  ;;  %v319_v38 = vsel %vm285_vm0, %v542_v36, 0.0 }
  0xb8   : > { %320 = vadd.xlane.f32.xlu1 %v319_v38  ;;  %363 = vadd.xlane.f32.xlu0 %v362_v39 }
  0xbc   : > { %357 = vadd.xlane.f32.xlu1 %v356_v41  ;;  %v383_v41 = vsub.f32 0.0, %v284_v32 }
  0xc0   : > { %360 = vadd.xlane.f32.xlu1 %v359_v44 }
  0xc4   : > { %366 = vadd.xlane.f32.xlu1 %v365_v46 }
 0x13d   : > { %v312_v47 = vpop.xlane.xlu1 %311 }
 0x13e   : > { %543 = vlog2.f32 %v312_v47 }
 0x141   : > { %v318_v48 = vpop.xlane.xlu1 %317  ;;  %v315_v49 = vpop.xlane.xlu0 %314 }
 0x142   : > { %545 = vlog2.f32 %v318_v48 }
 0x143   : > { %547 = vlog2.f32 %v315_v49 }
 0x145   : > { %v321_v50 = vpop.xlane.xlu1 %320  ;;  %v364_v0 = vpop.xlane.xlu0 %363 }
 0x146   : > { %549 = vlog2.f32 %v321_v50 }
 0x148   : > { %v544_v51 = vpop.eup %543 }
 0x149   : > { %v323_v52 = vmul.f32 0.6931472, %v544_v51  ;;  %v358_v53 = vpop.xlane.xlu1 %357 }
 0x14b   : > { %v330_v54 = vadd.f32 %v323_v52, %v288_v13  ;;  %v405_v13 = vshrl.u32 %v334_v26, 7 }
 0x14c   : > { %v546_v55 = vpop.eup %545 }
 0x14d   : > { %v548_v56 = vpop.eup %547  ;;  %v327_v57 = vmul.f32 0.6931472, %v546_v55  ;;  %v368_v58 = vsub.f32 %v358_v53, %v330_v54  ;;  %v361_v60 = vpop.xlane.xlu1 %360  ;;  %v406_v21 = vadd.s32 8, %v405_v13  ;;  %v408_v33 = vadd.s32 24, %v405_v13 }
 0x14e   : > { %v325_v59 = vmul.f32 0.6931472, %v548_v56 }
 0x14f   : > { %v372_v61 = vmul.f32 1.442695, %v368_v58  ;;  %v332_v62 = vadd.f32 %v327_v57, %v616_v14  ;;  %v410_v14 = vstv %s521_s25  ;;  %v384_v29 = vmul.f32 %v380_v16, %v368_v58 }
 0x150   : > { %v550_v63 = vpop.eup %549  ;;  %v331_v1 = vadd.f32 %v325_v59, %v619_v19  ;;  %v407_v19 = vadd.s32 16, %v405_v13  ;;  %v411_v23 = vadd.s32 %v410_v14, %v405_v13  ;;  %v412_v35 = vadd.s32 %v410_v14, %v406_v21 }
 0x151   : > { %v329_v2 = vmul.f32 0.6931472, %v550_v63  ;;  %551 = vpow2.f32 %v372_v61  ;;  %v370_v3 = vsub.f32 %v364_v0, %v332_v62  ;;  %v367_v8 = vpop.xlane.xlu1 %366  ;;  %v414_v45 = vadd.s32 %v410_v14, %v408_v33 }
 0x152   : > { %v369_v4 = vsub.f32 %v361_v60, %v331_v1  ;;  %v413_v26 = vadd.s32 %v410_v14, %v407_v19  ;;  %vm415_vm5 = vcmp.lt.s32.totalorder %v411_v23, 50  ;;  %vm416_vm7 = vcmp.lt.s32.totalorder %v412_v35, 50 }
 0x153   : > { %v376_v5 = vmul.f32 1.442695, %v370_v3  ;;  %v333_v6 = vadd.f32 %v329_v2, %v621_v20  ;;  %v282_v20 = vld [vmem:[%s264_s24 + $0x8] sm:$0xff]  ;;  %v386_v39 = vmul.f32 %v382_v27, %v370_v3  ;;  %vm418_vm9 = vcmp.lt.s32.totalorder %v414_v45, 50 }
 0x154   : > { %v374_v7 = vmul.f32 1.442695, %v369_v4  ;;  %v381_v30 = vsub.f32 0.0, %v282_v20  ;;  %vm417_vm6 = vcmp.lt.s32.totalorder %v413_v26, 50 }
 0x155   : > { %553 = vpow2.f32 %v376_v5  ;;  %v371_v9 = vsub.f32 %v367_v8, %v333_v6 }
 0x156   : > { %555 = vpow2.f32 %v374_v7  ;;  %v385_v43 = vmul.f32 %v381_v30, %v369_v4 }
 0x157   : > { %v378_v10 = vmul.f32 1.442695, %v371_v9  ;;  %v387_v50 = vmul.f32 %v383_v41, %v371_v9 }
 0x159   : > { %557 = vpow2.f32 %v378_v10 }
 0x15b   : > { %v552_v12 = vpop.eup %551 }
 0x15c   : > { %v388_v15 = vsub.f32 1.0, %v552_v12 }
 0x15e   : > { %v392_v18 = vmax.f32 %v388_v15, 0.0 }
 0x15f   : > { %v554_v22 = vpop.eup %553 }
 0x160   : > { %v556_v24 = vpop.eup %555  ;;  %v396_v25 = vmul.f32 %v392_v18, %v392_v18  ;;  %v390_v28 = vsub.f32 1.0, %v554_v22 }
 0x161   : > { %v389_v31 = vsub.f32 1.0, %v556_v24 }
 0x162   : > { %v394_v34 = vmax.f32 %v390_v28, 0.0  ;;  %v400_v37 = vmul.f32 %v396_v25, %v384_v29 }
 0x163   : > { %v558_v36 = vpop.eup %557  ;;  %v393_v38 = vmax.f32 %v389_v31, 0.0 }
 0x164   : > { %v398_v40 = vmul.f32 %v394_v34, %v394_v34  ;;  %v391_v42 = vsub.f32 1.0, %v558_v36  ;;  %v419_v48 = vsel %vm415_vm5, %v400_v37, 0.0 }
 0x165   : > { %v397_v44 = vmul.f32 %v393_v38, %v393_v38  ;;  %v424_v54 = vsel %vm423_vm8, %v419_v48, 0.0 }
 0x166   : > { %v402_v46 = vmul.f32 %v398_v40, %v386_v39  ;;  %v395_v47 = vmax.f32 %v391_v42, 0.0 }
 0x167   : > { %v401_v49 = vmul.f32 %v397_v44, %v385_v43 }
 0x168   : > { %v399_v51 = vmul.f32 %v395_v47, %v395_v47  ;;  %v421_v52 = vsel %vm417_vm6, %v402_v46, 0.0 }
 0x169   : > { %v420_v53 = vsel %vm416_vm7, %v401_v49, 0.0  ;;  %v427_v58 = vsel %vm423_vm8, %v421_v52, 0.0 }
 0x16a   : > { %v425_v55 = vsel %vm423_vm8, %v420_v53, 0.0  ;;  %v403_v56 = vmul.f32 %v399_v51, %v387_v50 }
 0x16b   : > { %v426_v57 = vadd.f32 %v425_v55, %v424_v54 }
 0x16c   : > { %v422_v59 = vsel %vm418_vm9, %v403_v56, 0.0 }
 0x16d   : > { %v428_v60 = vadd.f32 %v427_v58, %v426_v57  ;;  %v429_v61 = vsel %vm423_vm8, %v422_v59, 0.0 }
 0x16f   : > { %v430_v62 = vadd.f32 %v429_v61, %v428_v60 }
 0x171   : > { %v431_v63 = vrot.slane %v430_v62, 4 }
 0x173   : > { %v432_v0 = vadd.f32 %v431_v63, %v430_v62 }
 0x175   : > { %v433_v1 = vrot.slane %v432_v0, 2 }
 0x177   : > { %v434_v2 = vadd.f32 %v433_v1, %v432_v0 }
 0x179   : > { %v435_v3 = vrot.slane %v434_v2, 1 }
 0x17b   : > { %v436_v4 = vadd.f32 %v435_v3, %v434_v2 }
 0x17d   : > { %438 = vst.msk [vmem:[%s272_s28] sm:$0x1] %vm437_vm10, %v436_v4 }
 0x17e PF: > { %s13_s12 = sadd.s32 1, %s565_s12  }
 0x17f   : > { %p10_p5 = scmp.ge.s32.totalorder %s13_s12, 4  }
 0x181   :  { %12 = sbr.rel (!%p10_p5) target bundleno = 1 (0x1), region = 68 }

</bundles_post_ra>
